<compile_context>
chip_gen: v7x
topology: tpu7x:2x2x1
jax: 0.10.0
libtpu: 0.0.40
codegen_flags: <defaults>
</compile_context>

<pallas_src>
import functools

import jax
import jax.numpy as jnp
from jax import lax
from jax.experimental import pallas as pl
from jax.experimental.pallas import tpu as pltpu

LANE = 128
SUBLANE = 8


def _round_up(x, m):
    return (x + m - 1) // m * m


def _highway_update(s, pre, h_pad):
    """Highway blend from the fused [pre_h | pre_t] pre-activation (f32)."""
    h = jnp.tanh(pre[:, :h_pad])
    # sigmoid(x) == 0.5*(1 + tanh(x/2)) exactly; tanh is a single EUP op while
    # sigmoid lowers to exp + divide (2 EUP-class ops on the single EUP slot).
    t = 0.5 * (jnp.tanh(0.5 * pre[:, h_pad:]) + 1.0)
    return s + t * (h - s)                      # == h*t + s*(1-t)


def _rhn_resident_kernel(s_ref, x_ref, wx_ref, w_ref, b_ref, o_ref):
    """Fast path: grid = (batch_tile,). All layer weights resident in VMEM;
    the whole depth recurrence is an in-kernel unrolled loop."""
    h_pad = o_ref.shape[-1]
    n_layers = w_ref.shape[0]
    cdt = wx_ref.dtype                          # matmul compute dtype (bf16)

    s = s_ref[...].astype(jnp.float32)

    # Layer 0: fused input projection [Whx^T | Wtx^T] + fused recurrent matmul.
    pre0 = (jnp.dot(x_ref[...].astype(cdt), wx_ref[...],
                    preferred_element_type=jnp.float32)
            + jnp.dot(s.astype(cdt), w_ref[0],
                      preferred_element_type=jnp.float32)
            + b_ref[0])
    s = _highway_update(s, pre0, h_pad)

    # Layers 1 .. L-1: one fused MXU pass each (L is small and static).
    def body(l, s):
        pre = (jnp.dot(s.astype(cdt), w_ref[l],
                       preferred_element_type=jnp.float32) + b_ref[l])
        return _highway_update(s, pre, h_pad)

    s = lax.fori_loop(1, n_layers, body, s, unroll=True)
    o_ref[...] = s.astype(o_ref.dtype)


def _rhn_stream_kernel(s_ref, x_ref, wx_ref, wl_ref, b_ref, o_ref, xz_ref):
    """Large-H path: grid = (batch_tile i, layer l). Per-layer weight streamed;
    running state carried directly in the layer-invariant output block."""
    layer = pl.program_id(1)
    h_pad = o_ref.shape[-1]
    cdt = wx_ref.dtype

    @pl.when(layer == 0)
    def _():
        o_ref[...] = s_ref[...].astype(o_ref.dtype)
        xz_ref[...] = jnp.dot(x_ref[...].astype(cdt), wx_ref[...],
                              preferred_element_type=jnp.float32)

    @pl.when(layer == 1)
    def _():
        # Input projection only feeds layer 0; zero it so the unconditional
        # add below is a no-op for layers >= 1 (no per-layer select).
        xz_ref[...] = jnp.zeros_like(xz_ref)

    s = o_ref[...].astype(jnp.float32)
    pre = (jnp.dot(s.astype(cdt), wl_ref[0],
                   preferred_element_type=jnp.float32)
           + b_ref[layer] + xz_ref[...])
    o_ref[...] = _highway_update(s, pre, h_pad).astype(o_ref.dtype)
    # NOTE(v5e): when this path streams weights at large H / small bm, sweeping
    # pipeline_mode=pl.Buffered(3) on the weight BlockSpec can hide exposed DMA.


def fuse_rhn_params(w_h_x, w_t_x, w_h_h, b_h, w_t_h, b_t,
                    weight_dtype=jnp.bfloat16):
    """One-time parameter fusion (hoisted out of the per-timestep call path).

    Inputs use PyTorch nn.Linear layout:
      w_h_x, w_t_x : (H, I)      layer-0 input projections (no bias)
      w_h_h, w_t_h : (L, H, H)   recurrent weights per layer
      b_h,  b_t    : (L, H)      recurrent biases per layer

    Returns lane-padded, pre-transposed, pre-concatenated arrays:
      wx_cat : (I_pad, 2*H_pad)  weight_dtype (bf16 by default)
      w_cat  : (L, H_pad, 2*H_pad) weight_dtype
      b_cat  : (L, 1, 2*H_pad)   f32 (added post-MXU)
    Zero padding is exact: padded state columns stay 0 through every layer
    (h=0, t=0.5 -> 0 + 0.5*(0-0) = 0).
    """
    H, I = w_h_x.shape
    H_pad = _round_up(H, LANE)
    I_pad = _round_up(I, LANE)

    def pad2(a, rows, cols):
        return jnp.pad(a, ((0, rows - a.shape[0]), (0, cols - a.shape[1])))

    wx_cat = jnp.concatenate(
        [pad2(w_h_x.T, I_pad, H_pad), pad2(w_t_x.T, I_pad, H_pad)],
        axis=1).astype(weight_dtype)

    def pad_layers(a):          # (L, H, H) -> transposed, padded (L, H_pad, H_pad)
        a_t = jnp.swapaxes(a, 1, 2)
        return jnp.pad(a_t, ((0, 0), (0, H_pad - H), (0, H_pad - H)))

    w_cat = jnp.concatenate([pad_layers(w_h_h), pad_layers(w_t_h)],
                            axis=2).astype(weight_dtype)

    pad_b = lambda b: jnp.pad(b, ((0, 0), (0, H_pad - H)))
    b_cat = jnp.concatenate([pad_b(b_h), pad_b(b_t)], axis=1)[:, None, :]
    return wx_cat, w_cat, b_cat.astype(jnp.float32)


@functools.partial(jax.jit, static_argnames=("block_m",))
def rhn_cell_forward(x, s, wx_cat, w_cat, b_cat, *, block_m=256):
    """x: (B, I), s: (B, H). Fused params from fuse_rhn_params. Returns new s."""
    B, I = x.shape
    _, H = s.shape
    L, H_pad, H2_pad = w_cat.shape
    I_pad = wx_cat.shape[0]

    # Batch tiling: minimize padding waste and give the "parallel" axis >= 2
    # blocks when the batch allows (keeps both v7x TensorCores busy).
    B_pad8 = _round_up(B, SUBLANE)
    bm_cap = min(_round_up(block_m, SUBLANE), B_pad8)
    n_tiles = pl.cdiv(B_pad8, bm_cap)
    if n_tiles < 2 and B_pad8 >= 2 * SUBLANE:
        n_tiles = 2
    bm = _round_up(pl.cdiv(B_pad8, n_tiles), SUBLANE)
    n_tiles = pl.cdiv(B_pad8, bm)
    B_pad = n_tiles * bm

    x_p = jnp.pad(x.astype(jnp.float32), ((0, B_pad - B), (0, I_pad - I)))
    s_p = jnp.pad(s.astype(jnp.float32), ((0, B_pad - B), (0, H_pad - H)))

    nbytes = lambda a: a.size * a.dtype.itemsize
    w_bytes = nbytes(wx_cat) + nbytes(w_cat) + nbytes(b_cat)

    try:
        vmem_cap = pltpu.get_tpu_info().vmem_capacity_bytes
    except Exception:
        vmem_cap = 64 * 1024 * 1024            # v7x-safe fallback

    # Live f32 activations for one layer step (s, pre, h/t) plus slack.
    act_bytes = 4 * bm * (2 * H_pad + 2 * H2_pad)
    # Resident-path need: all weights (counted x2 as worst-case buffering) +
    # double-buffered s/x/out batch tiles + live activations.
    need_resident = 2 * w_bytes + 2 * 4 * bm * (2 * H_pad + I_pad) + act_bytes
    use_resident = need_resident <= int(0.7 * vmem_cap)

    flops = 2 * B_pad * H2_pad * (I_pad + L * H_pad)
    transcendentals = 2 * L * B_pad * H_pad
    bytes_accessed = (w_bytes + 4 * (x_p.size + 2 * B_pad * H_pad))
    cost = pl.CostEstimate(flops=flops, transcendentals=transcendentals,
                           bytes_accessed=bytes_accessed)

    if use_resident:
        needed = need_resident
        grid_spec = pltpu.PrefetchScalarGridSpec(
            num_scalar_prefetch=0,
            grid=(n_tiles,),
            in_specs=[
                pl.BlockSpec((bm, H_pad), lambda i: (i, 0)),             # s0
                pl.BlockSpec((bm, I_pad), lambda i: (i, 0)),             # x
                pl.BlockSpec((I_pad, H2_pad), lambda i: (0, 0)),         # [Whx^T|Wtx^T]
                pl.BlockSpec((L, H_pad, H2_pad), lambda i: (0, 0, 0)),   # all layer W
                pl.BlockSpec((L, 1, H2_pad), lambda i: (0, 0, 0)),       # all layer b
            ],
            out_specs=pl.BlockSpec((bm, H_pad), lambda i: (i, 0)),
        )
        kernel = _rhn_resident_kernel
        dim_sem = ("parallel",)
    else:
        # TODO(synk): add an output-column grid axis here for very large H on
        # v7x so only an (H_pad, tn) weight slab is double-buffered per step.
        needed = (2 * (nbytes(wx_cat)
                       + H_pad * H2_pad * w_cat.dtype.itemsize
                       + 4 * bm * (2 * H_pad + I_pad))
                  + nbytes(b_cat) + 4 * bm * H2_pad + act_bytes)
        grid_spec = pltpu.PrefetchScalarGridSpec(
            num_scalar_prefetch=0,
            grid=(n_tiles, L),
            in_specs=[
                pl.BlockSpec((bm, H_pad), lambda i, l: (i, 0)),             # s0
                pl.BlockSpec((bm, I_pad), lambda i, l: (i, 0)),             # x
                pl.BlockSpec((I_pad, H2_pad), lambda i, l: (0, 0)),         # [Whx^T|Wtx^T]
                pl.BlockSpec((1, H_pad, H2_pad), lambda i, l: (l, 0, 0)),   # layer W (streamed)
                pl.BlockSpec((L, 1, H2_pad), lambda i, l: (0, 0, 0)),       # biases (resident)
            ],
            out_specs=pl.BlockSpec((bm, H_pad), lambda i, l: (i, 0)),
            scratch_shapes=[pltpu.VMEM((bm, H2_pad), jnp.float32)],         # layer-0 x-proj
        )
        kernel = _rhn_stream_kernel
        dim_sem = ("parallel", "arbitrary")

    vmem_limit = int(min(0.85 * vmem_cap,
                         max(int(1.5 * needed), 32 * 1024 * 1024)))

    out = pl.pallas_call(
        kernel,
        out_shape=jax.ShapeDtypeStruct((B_pad, H_pad), jnp.float32),
        grid_spec=grid_spec,
        compiler_params=pltpu.CompilerParams(
            dimension_semantics=dim_sem,
            vmem_limit_bytes=vmem_limit,
        ),
        cost_estimate=cost,
    )(s_p, x_p, wx_cat, w_cat, b_cat)

    return out[:B, :H].astype(s.dtype)


def _reference(x, s, w_h_x, w_t_x, w_h_h, b_h, w_t_h, b_t):
    L = w_h_h.shape[0]
    h = jnp.tanh(x @ w_h_x.T + s @ w_h_h[0].T + b_h[0])
    t = jax.nn.sigmoid(x @ w_t_x.T + s @ w_t_h[0].T + b_t[0])
    s = h * t + s * (1.0 - t)
    for l in range(1, L):
        h = jnp.tanh(s @ w_h_h[l].T + b_h[l])
        t = jax.nn.sigmoid(s @ w_t_h[l].T + b_t[l])
        s = h * t + s * (1.0 - t)
    return s


if __name__ == "__main__":
    batch, input_size, hidden, depth = 16, 24, 32, 3

    key = jax.random.PRNGKey(0)
    ks = jax.random.split(key, 8)
    bound_h = 1.0 / jnp.sqrt(hidden)
    bound_i = 1.0 / jnp.sqrt(input_size)

    x = jax.random.normal(ks[0], (batch, input_size), jnp.float32)
    s0 = jax.random.normal(ks[1], (batch, hidden), jnp.float32)

    w_h_x = jax.random.uniform(ks[2], (hidden, input_size), jnp.float32, -bound_i, bound_i)
    w_t_x = jax.random.uniform(ks[3], (hidden, input_size), jnp.float32, -bound_i, bound_i)
    w_h_h = jax.random.uniform(ks[4], (depth, hidden, hidden), jnp.float32, -bound_h, bound_h)
    b_h = jax.random.uniform(ks[5], (depth, hidden), jnp.float32, -bound_h, bound_h)
    w_t_h = jax.random.uniform(ks[6], (depth, hidden, hidden), jnp.float32, -bound_h, bound_h)
    b_t = jax.random.uniform(ks[7], (depth, hidden), jnp.float32, -bound_h, bound_h)

    # One-time parameter fusion (not part of the per-timestep path).
    wx_cat, w_cat, b_cat = fuse_rhn_params(w_h_x, w_t_x, w_h_h, b_h, w_t_h, b_t)

    s_new = rhn_cell_forward(x, s0, wx_cat, w_cat, b_cat)
    s_new = jax.block_until_ready(s_new)

    ref = _reference(x, s0, w_h_x, w_t_x, w_h_h, b_h, w_t_h, b_t)
    assert s_new.shape == (batch, hidden)
    # bf16 weights in the MXU path -> loosened tolerance vs the f32 reference.
    err = float(jnp.max(jnp.abs(s_new - ref)))
    assert err < 3e-2, f"mismatch vs reference: max abs err {err}"

    print("KERNEL_OK")
</pallas_src>

<mosaic_0001>
module attributes {stable_mosaic.version = 11 : i64} {
  func.func @_rhn_resident_kernel(%arg0: i32, %arg1: memref<8x128xf32, #tpu.memory_space<vmem>>, %arg2: memref<8x128xf32, #tpu.memory_space<vmem>>, %arg3: memref<128x256xbf16, #tpu.memory_space<vmem>>, %arg4: memref<3x128x256xbf16, #tpu.memory_space<vmem>>, %arg5: memref<3x1x256xf32, #tpu.memory_space<vmem>>, %arg6: memref<8x128xf32, #tpu.memory_space<vmem>>) attributes {dimension_semantics = [#tpu.dimension_semantics<parallel>], iteration_bounds = array<i64: 2>, scalar_prefetch = 0 : i64, scratch_operands = 0 : i64, tpu.core_type = #tpu.core_type<tc>, window_params = [{transform_indices = @transform_0, window_bounds = array<i64: 8, 128>}, {transform_indices = @transform_1, window_bounds = array<i64: 8, 128>}, {pipeline_mode = #tpu.pipeline_mode<synchronous>, transform_indices = @transform_2, window_bounds = array<i64: 128, 256>}, {pipeline_mode = #tpu.pipeline_mode<synchronous>, transform_indices = @transform_3, window_bounds = array<i64: 3, 128, 256>}, {pipeline_mode = #tpu.pipeline_mode<synchronous>, transform_indices = @transform_4, window_bounds = array<i64: 3, 1, 256>}, {transform_indices = @transform_5, window_bounds = array<i64: 8, 128>}]} {
    %c0 = arith.constant 0 : index
    %c0_0 = arith.constant 0 : index
    %0 = vector.load %arg1[%c0, %c0_0] : memref<8x128xf32, #tpu.memory_space<vmem>>, vector<8x128xf32>
    %c0_1 = arith.constant 0 : index
    %c0_2 = arith.constant 0 : index
    %1 = vector.load %arg2[%c0_1, %c0_2] : memref<8x128xf32, #tpu.memory_space<vmem>>, vector<8x128xf32>
    %2 = arith.truncf %1 : vector<8x128xf32> to vector<8x128xbf16>
    %c0_3 = arith.constant 0 : index
    %c0_4 = arith.constant 0 : index
    %3 = vector.load %arg3[%c0_3, %c0_4] : memref<128x256xbf16, #tpu.memory_space<vmem>>, vector<128x256xbf16>
    %cst = arith.constant dense<0.000000e+00> : vector<8x256xf32>
    %4 = tpu.matmul %2, %3, %cst {dimension_numbers = #tpu.dot_dimension_numbers<[1], [0], [0], [1], [0, 0, 1, 1], [], []>} : vector<8x128xbf16>, vector<128x256xbf16>, vector<8x256xf32> -> vector<8x256xf32>
    %5 = arith.truncf %0 : vector<8x128xf32> to vector<8x128xbf16>
    %c0_5 = arith.constant 0 : index
    %c0_6 = arith.constant 0 : index
    %c0_7 = arith.constant 0 : index
    %6 = vector.load %arg4[%c0_5, %c0_6, %c0_7] : memref<3x128x256xbf16, #tpu.memory_space<vmem>>, vector<1x128x256xbf16>
    %7 = vector.shape_cast %6 : vector<1x128x256xbf16> to vector<128x256xbf16>
    %cst_8 = arith.constant dense<0.000000e+00> : vector<8x256xf32>
    %8 = tpu.matmul %5, %7, %cst_8 {dimension_numbers = #tpu.dot_dimension_numbers<[1], [0], [0], [1], [0, 0, 1, 1], [], []>} : vector<8x128xbf16>, vector<128x256xbf16>, vector<8x256xf32> -> vector<8x256xf32>
    %9 = arith.addf %4, %8 : vector<8x256xf32>
    %c0_9 = arith.constant 0 : index
    %c0_10 = arith.constant 0 : index
    %c0_11 = arith.constant 0 : index
    %10 = vector.load %arg5[%c0_9, %c0_10, %c0_11] : memref<3x1x256xf32, #tpu.memory_space<vmem>>, vector<1x1x256xf32>
    %11 = vector.shape_cast %10 : vector<1x1x256xf32> to vector<1x256xf32>
    %12 = vector.broadcast %11 : vector<1x256xf32> to vector<8x256xf32>
    %13 = arith.addf %9, %12 : vector<8x256xf32>
    %14 = vector.extract_strided_slice %13 {offsets = [0, 0], sizes = [8, 128], strides = [1, 1]} : vector<8x256xf32> to vector<8x128xf32>
    %15 = math.tanh %14 : vector<8x128xf32>
    %16 = vector.extract_strided_slice %13 {offsets = [0, 128], sizes = [8, 128], strides = [1, 1]} : vector<8x256xf32> to vector<8x128xf32>
    %cst_12 = arith.constant 5.000000e-01 : f32
    %17 = vector.broadcast %cst_12 : f32 to vector<8x128xf32>
    %18 = arith.mulf %17, %16 : vector<8x128xf32>
    %19 = math.tanh %18 : vector<8x128xf32>
    %cst_13 = arith.constant 1.000000e+00 : f32
    %20 = vector.broadcast %cst_13 : f32 to vector<8x128xf32>
    %21 = arith.addf %19, %20 : vector<8x128xf32>
    %cst_14 = arith.constant 5.000000e-01 : f32
    %22 = vector.broadcast %cst_14 : f32 to vector<8x128xf32>
    %23 = arith.mulf %22, %21 : vector<8x128xf32>
    %24 = arith.subf %15, %0 : vector<8x128xf32>
    %25 = arith.mulf %23, %24 : vector<8x128xf32>
    %26 = arith.addf %0, %25 : vector<8x128xf32>
    %c1_i32 = arith.constant 1 : i32
    %27 = arith.truncf %26 : vector<8x128xf32> to vector<8x128xbf16>
    %28 = arith.index_cast %c1_i32 : i32 to index
    %c0_15 = arith.constant 0 : index
    %c0_16 = arith.constant 0 : index
    %29 = vector.load %arg4[%28, %c0_15, %c0_16] : memref<3x128x256xbf16, #tpu.memory_space<vmem>>, vector<1x128x256xbf16>
    %30 = vector.shape_cast %29 : vector<1x128x256xbf16> to vector<128x256xbf16>
    %cst_17 = arith.constant dense<0.000000e+00> : vector<8x256xf32>
    %31 = tpu.matmul %27, %30, %cst_17 {dimension_numbers = #tpu.dot_dimension_numbers<[1], [0], [0], [1], [0, 0, 1, 1], [], []>} : vector<8x128xbf16>, vector<128x256xbf16>, vector<8x256xf32> -> vector<8x256xf32>
    %32 = arith.index_cast %c1_i32 : i32 to index
    %c0_18 = arith.constant 0 : index
    %c0_19 = arith.constant 0 : index
    %33 = vector.load %arg5[%32, %c0_18, %c0_19] : memref<3x1x256xf32, #tpu.memory_space<vmem>>, vector<1x1x256xf32>
    %34 = vector.shape_cast %33 : vector<1x1x256xf32> to vector<1x256xf32>
    %35 = vector.broadcast %34 : vector<1x256xf32> to vector<8x256xf32>
    %36 = arith.addf %31, %35 : vector<8x256xf32>
    %37 = vector.extract_strided_slice %36 {offsets = [0, 0], sizes = [8, 128], strides = [1, 1]} : vector<8x256xf32> to vector<8x128xf32>
    %38 = math.tanh %37 : vector<8x128xf32>
    %39 = vector.extract_strided_slice %36 {offsets = [0, 128], sizes = [8, 128], strides = [1, 1]} : vector<8x256xf32> to vector<8x128xf32>
    %cst_20 = arith.constant 5.000000e-01 : f32
    %40 = vector.broadcast %cst_20 : f32 to vector<8x128xf32>
    %41 = arith.mulf %40, %39 : vector<8x128xf32>
    %42 = math.tanh %41 : vector<8x128xf32>
    %cst_21 = arith.constant 1.000000e+00 : f32
    %43 = vector.broadcast %cst_21 : f32 to vector<8x128xf32>
    %44 = arith.addf %42, %43 : vector<8x128xf32>
    %cst_22 = arith.constant 5.000000e-01 : f32
    %45 = vector.broadcast %cst_22 : f32 to vector<8x128xf32>
    %46 = arith.mulf %45, %44 : vector<8x128xf32>
    %47 = arith.subf %38, %26 : vector<8x128xf32>
    %48 = arith.mulf %46, %47 : vector<8x128xf32>
    %49 = arith.addf %26, %48 : vector<8x128xf32>
    %c2_i32 = arith.constant 2 : i32
    %50 = arith.truncf %49 : vector<8x128xf32> to vector<8x128xbf16>
    %51 = arith.index_cast %c2_i32 : i32 to index
    %c0_23 = arith.constant 0 : index
    %c0_24 = arith.constant 0 : index
    %52 = vector.load %arg4[%51, %c0_23, %c0_24] : memref<3x128x256xbf16, #tpu.memory_space<vmem>>, vector<1x128x256xbf16>
    %53 = vector.shape_cast %52 : vector<1x128x256xbf16> to vector<128x256xbf16>
    %cst_25 = arith.constant dense<0.000000e+00> : vector<8x256xf32>
    %54 = tpu.matmul %50, %53, %cst_25 {dimension_numbers = #tpu.dot_dimension_numbers<[1], [0], [0], [1], [0, 0, 1, 1], [], []>} : vector<8x128xbf16>, vector<128x256xbf16>, vector<8x256xf32> -> vector<8x256xf32>
    %55 = arith.index_cast %c2_i32 : i32 to index
    %c0_26 = arith.constant 0 : index
    %c0_27 = arith.constant 0 : index
    %56 = vector.load %arg5[%55, %c0_26, %c0_27] : memref<3x1x256xf32, #tpu.memory_space<vmem>>, vector<1x1x256xf32>
    %57 = vector.shape_cast %56 : vector<1x1x256xf32> to vector<1x256xf32>
    %58 = vector.broadcast %57 : vector<1x256xf32> to vector<8x256xf32>
    %59 = arith.addf %54, %58 : vector<8x256xf32>
    %60 = vector.extract_strided_slice %59 {offsets = [0, 0], sizes = [8, 128], strides = [1, 1]} : vector<8x256xf32> to vector<8x128xf32>
    %61 = math.tanh %60 : vector<8x128xf32>
    %62 = vector.extract_strided_slice %59 {offsets = [0, 128], sizes = [8, 128], strides = [1, 1]} : vector<8x256xf32> to vector<8x128xf32>
    %cst_28 = arith.constant 5.000000e-01 : f32
    %63 = vector.broadcast %cst_28 : f32 to vector<8x128xf32>
    %64 = arith.mulf %63, %62 : vector<8x128xf32>
    %65 = math.tanh %64 : vector<8x128xf32>
    %cst_29 = arith.constant 1.000000e+00 : f32
    %66 = vector.broadcast %cst_29 : f32 to vector<8x128xf32>
    %67 = arith.addf %65, %66 : vector<8x128xf32>
    %cst_30 = arith.constant 5.000000e-01 : f32
    %68 = vector.broadcast %cst_30 : f32 to vector<8x128xf32>
    %69 = arith.mulf %68, %67 : vector<8x128xf32>
    %70 = arith.subf %61, %49 : vector<8x128xf32>
    %71 = arith.mulf %69, %70 : vector<8x128xf32>
    %72 = arith.addf %49, %71 : vector<8x128xf32>
    %c2_i32_31 = arith.constant 2 : i32
    %c0_32 = arith.constant 0 : index
    %c0_33 = arith.constant 0 : index
    %73 = vector.load %arg6[%c0_32, %c0_33] : memref<8x128xf32, #tpu.memory_space<vmem>>, vector<8x128xf32>
    tpu.vector_store %arg6[%c0_32, %c0_33], %72 {strides = array<i32>} : memref<8x128xf32, #tpu.memory_space<vmem>>, vector<8x128xf32>,
    return
  }
  func.func @transform_0(%arg0: i32) -> (i32, i32) {
    %c0_i32 = arith.constant 0 : i32
    %c0_i32_0 = arith.constant 0 : i32
    return %arg0, %c0_i32 : i32, i32
  }
  func.func @transform_1(%arg0: i32) -> (i32, i32) {
    %c0_i32 = arith.constant 0 : i32
    %c0_i32_0 = arith.constant 0 : i32
    return %arg0, %c0_i32 : i32, i32
  }
  func.func @transform_2(%arg0: i32) -> (i32, i32) {
    %c0_i32 = arith.constant 0 : i32
    %c0_i32_0 = arith.constant 0 : i32
    %c0_i32_1 = arith.constant 0 : i32
    return %c0_i32, %c0_i32_0 : i32, i32
  }
  func.func @transform_3(%arg0: i32) -> (i32, i32, i32) {
    %c0_i32 = arith.constant 0 : i32
    %c0_i32_0 = arith.constant 0 : i32
    %c0_i32_1 = arith.constant 0 : i32
    %c0_i32_2 = arith.constant 0 : i32
    return %c0_i32, %c0_i32_0, %c0_i32_1 : i32, i32, i32
  }
  func.func @transform_4(%arg0: i32) -> (i32, i32, i32) {
    %c0_i32 = arith.constant 0 : i32
    %c0_i32_0 = arith.constant 0 : i32
    %c0_i32_1 = arith.constant 0 : i32
    %c0_i32_2 = arith.constant 0 : i32
    return %c0_i32, %c0_i32_0, %c0_i32_1 : i32, i32, i32
  }
  func.func @transform_5(%arg0: i32) -> (i32, i32) {
    %c0_i32 = arith.constant 0 : i32
    %c0_i32_0 = arith.constant 0 : i32
    return %arg0, %c0_i32 : i32, i32
  }
}

</mosaic_0001>

<bundles_post_ra>
// kernel: rhn_cell_forward.1
= control target key start
LH: loop header
LB: loop body
LE: loop exit
PB: predicated region body
PF: predicated region fallthrough
CT: control target
= control target key end

     0   :  { %10 = vsyncpa [#allocation3], 0  ;;  %s1616_s0 = inlined_call_operand.vmem [shape: f32[16,128], index: 0, kind: input, shape index: {}]   ;;  %s1617_s1 = inlined_call_operand.vmem [shape: f32[16,128], index: 1, kind: input, shape index: {}]   ;;  %s1618_s2 = inlined_call_operand.hbm [shape: bf16[128,256], index: 2, kind: input, shape index: {}]   ;;  %s1619_s3 = inlined_call_operand.hbm [shape: bf16[3,128,256], index: 3, kind: input, shape index: {}]   ;;  %s1620_s4 = inlined_call_operand.vmem [shape: f32[3,1,256], index: 4, kind: input, shape index: {}]   ;;  %s1621_s5 = inlined_call_operand.hbm [shape: f32[16,128], index: 5, kind: output, shape index: {}]  }
   0x1   :  { %11 = vsyncpa [#allocation6], 0 }
   0x2   :  { %12 = vsyncpa [#allocation4], 0 }
   0x3   :  { %14 = vsyncpa [#allocation4 + $0x1], 0  ;;  %s1412_s18 = smov 0   ;;  %s1414_s19 = smov 0  }
   0x4   :  { %s1416_s20 = smov 0   ;;  %s1418_s21 = smov 0  }
   0x5 LB: > { %s1433_s22 = sadd.s32 4294967295, %s1374_s21   ;;  %s996_s23 = sadd.s32 4294967294, %s1374_s21   ;;  %s1374_s21 = sphi %s1418_s21, %s1639_s21   ;;  %s1370_s20 = sphi %s1416_s20, %s1638_s20   ;;  %s1366_s19 = sphi %s1414_s19, %s1637_s19   ;;  %s1362_s18 = sphi %s1412_s18, %s1636_s18  }
   0x6   : > { %s1437_s24 = sadd.s32 1, %s1374_s21   ;;  %s142_s25 = sadd.s32 1, %s1370_s20 }
   0x7   : > { %s139_s26 = ssub.s32 %s1374_s21, %s1437_s24  ;;  %p152_p0 = scmp.ne.s32.totalorder %s1370_s20, %s1366_s19 }
   0x8   : > { %p140_p1 = scmp.eq.s32.totalorder %s139_s26, 0  ;;  %p153_p2 = scmp.eq.s32.totalorder %s1433_s22, 1 }
   0x9   : > { %p158_p3 = scmp.ne.s32.totalorder %s1366_s19, %s1362_s18  ;;  %p159_p4 = scmp.eq.s32.totalorder %s996_s23, 1 }
   0xa   : > { %s1448_s27 = scalar_select %p140_p1, %s1370_s20, %s142_s25  }
   0xb   : > { %p1450_p5 = por %p153_p2, %p152_p0  ;;  %p1454_p6 = por %p159_p4, %p158_p3 }
   0xc   : > { %p997_p7 = scmp.ge.s32.totalorder %s1374_s21, 1  ;;  %p166_p8 = scmp.lt.s32.totalorder %s1374_s21, 3 }
   0xd   : > { %s1625_s28 = scalar_select %p1450_p5, 1, 0 }
   0xe   : > { %s1626_s29 = scalar_select %p1454_p6, 1, 0 }
   0xf   : > { %p1622_p9 = scmp.eq.s32.totalorder %s1433_s22, 0  ;;  %p1461_p10 = pnand %p997_p7, %p166_p8 }
  0x10   : > { %s1376_s6 = smov [#allocation2]   ;;  %s1377_s9 = smov [#allocation5]  }
  0x11   : > { %s1627_s30 = scalar_select %p1461_p10, 1, 0 }
  0x12   : > { %s178_s7 = sshll.u32 %s1376_s6, 4  ;;  %p1087_p11 = pneg %p1461_p10  ;;  %s179_s7 = int_to_ptr.vmem [resolvable:$true] %s178_s7 }
  0x13   : > { %s191_s10 = sshll.u32 %s1377_s9, 4  ;;  %s1248_s13 = scalar_lea.hbm %s1618_s2, 2048  ;;  %s1473_s10 = int_to_ptr.vmem [resolvable:$true] %s191_s10 }
  0x14   : > { %p1469_p12 = pnand %p1622_p9, %p1087_p11  ;;  %p1249_p13 = scmp.ne.s32.totalorder %s1618_s2, %s1248_s13 }
  0x15   : > { %p1255_p3 = scmp.lt.u32.totalorder %s1248_s13, %s1618_s2 }
  0x16   : > { %p1250_p0 = pneg %p1469_p12 }
  0x18   : > { %p1251_p1 = pnand %p1250_p0, %p1249_p13 }
  0x1a   : > { %p1252_p2 = pneg %p1251_p1 }
  0x1c   : > { %p1257_p4 = pnand %p1255_p3, %p1252_p2 }
  0x1e   : > { %1260 = shalt.err (!%p1257_p4)
}
  0x1f   : > { %s1261_s23 = scalar_lea.vmem %s179_s7, 2048  ;;  %p1269_p9 = scmp.lt.s32.totalorder %s179_s7, %s179_s7 }
  0x20   : > { %p1262_p7 = scmp.ne.s32.totalorder %s179_s7, %s1261_s23  ;;  %p1270_p6 = scmp.lt.s32.totalorder %s1261_s23, %s1261_s23 }
  0x22   : > { %p1264_p8 = pnand %p1262_p7, %p1250_p0  ;;  %p1271_p5 = por %p1270_p6, %p1269_p9 }
  0x24   : > { %p1265_p11 = pneg %p1264_p8 }
  0x26   : > { %p1272_p10 = pnand %p1271_p5, %p1265_p11 }
  0x28   : > { %1275 = shalt.err (!%p1272_p10)
}
  0x29   : > { %s1378_s25 = smov 128   ;;  %s1379_s26 = smov 8  }
  0x2a   : > { %1090 = dma.hbm_to_vmem [thread:$0]  (!%p1469_p12), %s1618_s2, 2048, %s179_s7, [#allocation3], %s1378_s25, %s1378_s25, %s1379_s26  }
  0x2b   : > { %s1276_s13 = scalar_lea.hbm %s1619_s3, 6144 }
  0x2c   : > { %p1277_p13 = scmp.ne.s32.totalorder %s1619_s3, %s1276_s13  ;;  %p1283_p9 = scmp.lt.u32.totalorder %s1276_s13, %s1619_s3 }
  0x2e   : > { %p1279_p5 = pnand %p1277_p13, %p1250_p0 }
  0x30   : > { %p1280_p6 = pneg %p1279_p5 }
  0x32   : > { %p1285_p10 = pnand %p1283_p9, %p1280_p6 }
  0x34   : > { %1288 = shalt.err (!%p1285_p10)
}
  0x35   : > { %s1289_s7 = scalar_lea.vmem %s1473_s10, 6144  ;;  %p1297_p4 = scmp.lt.s32.totalorder %s1473_s10, %s1473_s10 }
  0x36   : > { %p1290_p1 = scmp.ne.s32.totalorder %s1473_s10, %s1289_s7  ;;  %p1298_p7 = scmp.lt.s32.totalorder %s1289_s7, %s1289_s7 }
  0x38   : > { %p1292_p2 = pnand %p1290_p1, %p1250_p0  ;;  %p1299_p8 = por %p1298_p7, %p1297_p4 }
  0x3a   : > { %p1293_p3 = pneg %p1292_p2 }
  0x3c   : > { %p1300_p11 = pnand %p1299_p8, %p1293_p3 }
  0x3e   : > { %1303 = shalt.err (!%p1300_p11)
}
  0x3f   : > { %1093 = dma.hbm_to_vmem [thread:$0]  (!%p1469_p12), %s1619_s3, 6144, %s1473_s10, [#allocation6], %s1378_s25, %s1378_s25, %s1379_s26  }
  0x40   : > { %p1629_p13 = scmp.ne.s32.totalorder %s1627_s30, 0 }
  0x41   : > { %p1630_p5 = scmp.eq.s32.totalorder (!%p1629_p13), %s1433_s22, 0 }
  0x42   : > { %224 = sbr.rel (%p1629_p13) target bundleno = 840 (0x348), region = 40 }
  0x49   : > { %1349 = dma.done.wait (%p1630_p5), [#allocation3], 2048   ;;  %p1631_p0 = pmov %p1630_p5 }
  0x4b   : > { %1351 = vsyncadd (%p1631_p0), [#allocation3], 4294965248  ;;  %p1632_p6 = pmov %p1631_p0 }
  0x4c   : > { %p1633_p9 = pmov %p1631_p0 }
  0x4d   : > { %1353 = dma.done.wait (%p1632_p6), [#allocation6], 6144  }
  0x4e   : > { %1355 = vsyncadd (%p1633_p9), [#allocation6], 4294961152  ;;  %v1380_v0 = vmov 0   ;;  %v1140_v1 = vld [vmem:[#allocation5 + $0x4] ss:$8 sps:$4 sm:$0xff]   ;;  %p259_p12 = scmp.lt.s32.totalorder %s1433_s22, 1  ;;  %v548_v57 = vlaneseq }
  0x4f   : > { %416 = vmatprep.mubr.bf16.mxu0 %v1380_v0  ;;  %537 = vmatprep.mubr.bf16.mxu1 %v1380_v0  ;;  %v1142_v2 = vld [vmem:[#allocation2 + $0x4] ss:$8 sps:$4 sm:$0xff]   ;;  %v1144_v3 = vld [vmem:[#allocation5] ss:$8 sps:$4 sm:$0xff]   ;;  %v1146_v5 = vld [vmem:[#allocation5 + $0x14] ss:$8 sps:$4 sm:$0xff]  }
  0x50   : > { %384 = vmatprep.subr.bf16.mxu0 %v1140_v1  ;;  %v1145_v4 = vld [vmem:[#allocation2] ss:$8 sps:$4 sm:$0xff]   ;;  %505 = vmatprep.subr.bf16.mxu1 %v1142_v2  ;;  %v1148_v6 = vld [vmem:[#allocation2 + $0x14] ss:$8 sps:$4 sm:$0xff]   ;;  %v1150_v7 = vld [vmem:[#allocation5 + $0x10] ss:$8 sps:$4 sm:$0xff]  }
  0x51   : > { %385 = vmatpush1.bf16.msra.mxu0 %v1144_v3  ;;  %506 = vmatpush1.bf16.msra.mxu1 %v1145_v4  ;;  %v1151_v8 = vld [vmem:[#allocation2 + $0x10] ss:$8 sps:$4 sm:$0xff]   ;;  %v1152_v9 = vld [vmem:[#allocation5 + $0x24] ss:$8 sps:$4 sm:$0xff]   ;;  %v1156_v11 = vld [vmem:[#allocation5 + $0x20] ss:$8 sps:$4 sm:$0xff]  }
  0x52   : > { %386 = vmatprep.subr.bf16.mxu0 %v1146_v5  ;;  %507 = vmatprep.subr.bf16.mxu1 %v1148_v6  ;;  %v1154_v10 = vld [vmem:[#allocation2 + $0x24] ss:$8 sps:$4 sm:$0xff]   ;;  %v1157_v12 = vld [vmem:[#allocation2 + $0x20] ss:$8 sps:$4 sm:$0xff]   ;;  %v1158_v13 = vld [vmem:[#allocation5 + $0x34] ss:$8 sps:$4 sm:$0xff]  }
  0x53   : > { %v1160_v14 = vld [vmem:[#allocation2 + $0x34] ss:$8 sps:$4 sm:$0xff]   ;;  %v1162_v15 = vld [vmem:[#allocation5 + $0x30] ss:$8 sps:$4 sm:$0xff]   ;;  %v1164_v17 = vld [vmem:[#allocation5 + $0x44] ss:$8 sps:$4 sm:$0xff]  }
  0x54   : > { %v1163_v16 = vld [vmem:[#allocation2 + $0x30] ss:$8 sps:$4 sm:$0xff]   ;;  %v1166_v18 = vld [vmem:[#allocation2 + $0x44] ss:$8 sps:$4 sm:$0xff]   ;;  %v1168_v19 = vld [vmem:[#allocation5 + $0x40] ss:$8 sps:$4 sm:$0xff]  }
  0x55   : > { %387 = vmatpush1.bf16.msra.mxu0 %v1150_v7  ;;  %508 = vmatpush1.bf16.msra.mxu1 %v1151_v8  ;;  %v1169_v20 = vld [vmem:[#allocation2 + $0x40] ss:$8 sps:$4 sm:$0xff]   ;;  %v1170_v21 = vld [vmem:[#allocation5 + $0x54] ss:$8 sps:$4 sm:$0xff]   ;;  %s260_s30 = scalar_select %p259_p12, %s1433_s22, 1  ;;  %v549_v58 = vshrl.u32 %v548_v57, 7 }
  0x56   : > { %388 = vmatprep.subr.bf16.mxu0 %v1152_v9  ;;  %509 = vmatprep.subr.bf16.mxu1 %v1154_v10  ;;  %v1172_v22 = vld [vmem:[#allocation2 + $0x54] ss:$8 sps:$4 sm:$0xff]   ;;  %v1174_v23 = vld [vmem:[#allocation5 + $0x50] ss:$8 sps:$4 sm:$0xff]   ;;  %v1176_v25 = vld [vmem:[#allocation5 + $0x64] ss:$8 sps:$4 sm:$0xff]  }
  0x57   : > { %v1175_v24 = vld [vmem:[#allocation2 + $0x50] ss:$8 sps:$4 sm:$0xff]   ;;  %s1005_s8 = sshll.u32 %s260_s30, 3  ;;  %v1178_v26 = vld [vmem:[#allocation2 + $0x64] ss:$8 sps:$4 sm:$0xff]   ;;  %v1548_v59 = vsub.s32 0, %v549_v58 }
  0x58   : > { %v1180_v27 = vld [vmem:[#allocation5 + $0x60] ss:$8 sps:$4 sm:$0xff]   ;;  %v1182_v29 = vld [vmem:[#allocation5 + $0x74] ss:$8 sps:$4 sm:$0xff]   ;;  %s262_s26 = scalar_lea.vmem %s1616_s0, %s1005_s8  ;;  %s266_s12 = scalar_lea.vmem %s1617_s1, %s1005_s8  ;;  %v1186_v31 = vld [vmem:[#allocation5 + $0x70] ss:$8 sps:$4 sm:$0xff]  }
  0x59   : > { %389 = vmatpush1.bf16.msra.mxu0 %v1156_v11  ;;  %510 = vmatpush1.bf16.msra.mxu1 %v1157_v12  ;;  %v1181_v28 = vld [vmem:[#allocation2 + $0x60] ss:$8 sps:$4 sm:$0xff]   ;;  %v1184_v30 = vld [vmem:[#allocation2 + $0x74] ss:$8 sps:$4 sm:$0xff]   ;;  %v1187_v32 = vld [vmem:[#allocation2 + $0x70] ss:$8 sps:$4 sm:$0xff]  }
  0x5a   : > { %390 = vmatprep.subr.bf16.mxu0 %v1158_v13  ;;  %511 = vmatprep.subr.bf16.mxu1 %v1160_v14  ;;  %v1542_v33 = vld [vmem:[%s262_s26] sm:$0xff]  ;;  %v1193_v39 = vld [vmem:[#allocation5 + $0x94] ss:$8 sps:$4 sm:$0xff]   ;;  %v1191_v40 = vld [vmem:[#allocation5 + $0x90] ss:$8 sps:$4 sm:$0xff]   ;;  %v1553_v61 = vsub.s32 1, %v549_v58 }
  0x5b   : > { %v269_v34 = vld [vmem:[%s266_s12] sm:$0xff]  ;;  %v287_v37 = vpack.c.bf16 %v1542_v33, %v1542_v33  ;;  %v1199_v43 = vld [vmem:[#allocation5 + $0xb4] ss:$8 sps:$4 sm:$0xff]   ;;  %v1197_v44 = vld [vmem:[#allocation5 + $0xb0] ss:$8 sps:$4 sm:$0xff]   ;;  %s256_s23 = sand.u32 1, %s1366_s19  }
  0x5c   : > { %v1190_v35 = vld [vmem:[#allocation5 + $0x84] ss:$8 sps:$4 sm:$0xff]   ;;  %v1188_v36 = vld [vmem:[#allocation5 + $0x80] ss:$8 sps:$4 sm:$0xff]   ;;  %v270_v38 = vpack.c.bf16 %v269_v34, %v269_v34  ;;  %v1205_v47 = vld [vmem:[#allocation5 + $0xd4] ss:$8 sps:$4 sm:$0xff]  }
  0x5d   : > { %391 = vmatpush1.bf16.msra.mxu0 %v1162_v15  ;;  %512 = vmatpush1.bf16.msra.mxu1 %v1163_v16  ;;  %v1196_v41 = vld [vmem:[#allocation5 + $0xa4] ss:$8 sps:$4 sm:$0xff]   ;;  %v1194_v42 = vld [vmem:[#allocation5 + $0xa0] ss:$8 sps:$4 sm:$0xff]   ;;  %v1203_v48 = vld [vmem:[#allocation5 + $0xd0] ss:$8 sps:$4 sm:$0xff]  }
  0x5e   : > { %392 = vmatprep.subr.bf16.mxu0 %v1164_v17  ;;  %513 = vmatprep.subr.bf16.mxu1 %v1166_v18  ;;  %v1202_v45 = vld [vmem:[#allocation5 + $0xc4] ss:$8 sps:$4 sm:$0xff]   ;;  %v1200_v46 = vld [vmem:[#allocation5 + $0xc0] ss:$8 sps:$4 sm:$0xff]   ;;  %v1211_v51 = vld [vmem:[#allocation5 + $0xf4] ss:$8 sps:$4 sm:$0xff]  }
  0x5f   : > { %v1208_v49 = vld [vmem:[#allocation5 + $0xe4] ss:$8 sps:$4 sm:$0xff]   ;;  %v1206_v50 = vld [vmem:[#allocation5 + $0xe0] ss:$8 sps:$4 sm:$0xff]   ;;  %v1209_v52 = vld [vmem:[#allocation5 + $0xf0] ss:$8 sps:$4 sm:$0xff]  }
  0x60   : > { %v1212_v53 = vld [vmem:[#allocation5 + $0x100] ss:$8 sps:$4 sm:$0xff]   ;;  %v1214_v54 = vld [vmem:[#allocation5 + $0x104] ss:$8 sps:$4 sm:$0xff]   ;;  %v1217_v55 = vld [vmem:[#allocation5 + $0x114] ss:$8 sps:$4 sm:$0xff]  }
  0x61   : > { %393 = vmatpush1.bf16.msra.mxu0 %v1168_v19  ;;  %514 = vmatpush1.bf16.msra.mxu1 %v1169_v20  ;;  %v1215_v56 = vld [vmem:[#allocation5 + $0x110] ss:$8 sps:$4 sm:$0xff]   ;;  %v546_v60 = vld [vmem:[%s1620_s4] sm:$0x3]  ;;  %s1004_s6 = sshll.u32 %s256_s23, 3  ;;  %s1074_s30 = sshll.u32 %s1433_s22, 7 }
  0x62   : > { %394 = vmatprep.subr.bf16.mxu0 %v1170_v21  ;;  %515 = vmatprep.subr.bf16.mxu1 %v1172_v22  ;;  %v551_v62 = vrot.slane %v546_v60, %v1548_v59  ;;  %v555_v1 = vrot.slane %v546_v60, %v1553_v61  ;;  %v1220_v21 = vld [vmem:[#allocation5 + $0x124] ss:$8 sps:$4 sm:$0xff]   ;;  %v1218_v22 = vld [vmem:[#allocation5 + $0x120] ss:$8 sps:$4 sm:$0xff]   ;;  %s258_s8 = scalar_lea.vmem [#allocation7], %s1004_s6  ;;  %s1574_s9 = scalar_lea.hbm %s1621_s5, %s1074_s30 }
  0x63   : > { %s903_s10 = sshll.u32 %s258_s8, 4  ;;  %s890_s11 = scalar_lea.sflag [#allocation4], %s256_s23  ;;  %s1576_s10 = int_to_ptr.vmem [resolvable:$true] %s903_s10 }
  0x64   : > { %s1304_s12 = scalar_lea.vmem %s1576_s10, 128  ;;  %p1634_p1 = scmp.ne.s32.totalorder %s1625_s28, 0 }
  0x65   : > { %395 = vmatpush1.bf16.msra.mxu0 %v1174_v23  ;;  %516 = vmatpush1.bf16.msra.mxu1 %v1175_v24  ;;  %v1223_v23 = vld [vmem:[#allocation5 + $0x134] ss:$8 sps:$4 sm:$0xff]   ;;  %v1221_v24 = vld [vmem:[#allocation5 + $0x130] ss:$8 sps:$4 sm:$0xff]   ;;  %p1305_p10 = scmp.ne.s32.totalorder %s1576_s10, %s1304_s12  ;;  %s1381_s22 = smov [#allocation7]  }
  0x66   : > { %396 = vmatprep.subr.bf16.mxu0 %v1176_v25  ;;  %517 = vmatprep.subr.bf16.mxu1 %v1178_v26  ;;  %v1226_v25 = vld [vmem:[#allocation5 + $0x144] ss:$8 sps:$4 sm:$0xff]   ;;  %v1224_v26 = vld [vmem:[#allocation5 + $0x140] ss:$8 sps:$4 sm:$0xff]   ;;  %s1308_s13 = sshll.u32 %s1381_s22, 4  ;;  %s1309_s13 = int_to_ptr.vmem [resolvable:$false] %s1308_s13 }
  0x67   : > { %p1306_p2 = pnand %p1305_p10, %p1634_p1  ;;  %s1310_s14 = scalar_lea.vmem %s1309_s13, 256 }
  0x68   : > { %p1311_p4 = scmp.lt.s32.totalorder %s1576_s10, %s1309_s13  ;;  %p1312_p7 = scmp.lt.s32.totalorder %s1310_s14, %s1304_s12 }
  0x69   : > { %397 = vmatpush1.bf16.msra.mxu0 %v1180_v27  ;;  %518 = vmatpush1.bf16.msra.mxu1 %v1181_v28  ;;  %v1229_v27 = vld [vmem:[#allocation5 + $0x154] ss:$8 sps:$4 sm:$0xff]   ;;  %v1227_v28 = vld [vmem:[#allocation5 + $0x150] ss:$8 sps:$4 sm:$0xff]   ;;  %p1307_p3 = pneg %p1306_p2 }
  0x6a   : > { %398 = vmatprep.subr.bf16.mxu0 %v1182_v29  ;;  %519 = vmatprep.subr.bf16.mxu1 %v1184_v30  ;;  %v1232_v29 = vld [vmem:[#allocation5 + $0x164] ss:$8 sps:$4 sm:$0xff]   ;;  %v1230_v30 = vld [vmem:[#allocation5 + $0x160] ss:$8 sps:$4 sm:$0xff]   ;;  %p1313_p8 = por %p1312_p7, %p1311_p4 }
  0x6c   : > { %p1314_p11 = pnand %p1313_p8, %p1307_p3 }
  0x6d   : > { %399 = vmatpush1.bf16.msra.mxu0 %v1186_v31  ;;  %520 = vmatpush1.bf16.msra.mxu1 %v1187_v32  ;;  %v1235_v31 = vld [vmem:[#allocation5 + $0x174] ss:$8 sps:$4 sm:$0xff]   ;;  %v1233_v32 = vld [vmem:[#allocation5 + $0x170] ss:$8 sps:$4 sm:$0xff]  }
  0x6e   : > { %679 = vmatprep.subr.bf16.mxu0 %v1190_v35  ;;  %839 = vmatprep.subr.bf16.mxu1 %v1214_v54 }
  0x70   : > { %417 = vmatmul.mubr.bf16.vlgmr.msra.gmra.mrb[0].mxu0 %v287_v37  ;;  %538 = vmatmul.mubr.bf16.vlgmr.msra.gmra.mrb[0].mxu1 %v270_v38 }
  0x71   : > { %680 = vmatpush1.bf16.msra.mxu0 %v1188_v36  ;;  %711 = vmatprep.mubr.bf16.mxu0 %v1380_v0 }
  0x72   : > { %871 = vmatprep.mubr.bf16.mxu1 %v1380_v0  ;;  %681 = vmatprep.subr.bf16.mxu0 %v1193_v39 }
  0x73   : > { %840 = vmatpush1.bf16.msra.mxu1 %v1212_v53 }
  0x74   : > { %841 = vmatprep.subr.bf16.mxu1 %v1217_v55 }
  0x75   : > { %682 = vmatpush1.bf16.msra.mxu0 %v1191_v40 }
  0x76   : > { %683 = vmatprep.subr.bf16.mxu0 %v1196_v41 }
  0x77   : > { %842 = vmatpush1.bf16.msra.mxu1 %v1215_v56 }
  0x78   : > { %843 = vmatprep.subr.bf16.mxu1 %v1220_v21 }
  0x79   : > { %684 = vmatpush1.bf16.msra.mxu0 %v1194_v42 }
  0x7a   : > { %685 = vmatprep.subr.bf16.mxu0 %v1199_v43 }
  0x7b   : > { %844 = vmatpush1.bf16.msra.mxu1 %v1218_v22 }
  0x7c   : > { %845 = vmatprep.subr.bf16.mxu1 %v1223_v23 }
  0x7d   : > { %686 = vmatpush1.bf16.msra.mxu0 %v1197_v44 }
  0x7e   : > { %687 = vmatprep.subr.bf16.mxu0 %v1202_v45 }
  0x7f   : > { %846 = vmatpush1.bf16.msra.mxu1 %v1221_v24 }
  0x80   : > { %847 = vmatprep.subr.bf16.mxu1 %v1226_v25 }
  0x81   : > { %688 = vmatpush1.bf16.msra.mxu0 %v1200_v46 }
  0x82   : > { %689 = vmatprep.subr.bf16.mxu0 %v1205_v47 }
  0x83   : > { %848 = vmatpush1.bf16.msra.mxu1 %v1224_v26 }
  0x84   : > { %849 = vmatprep.subr.bf16.mxu1 %v1229_v27 }
  0x85   : > { %690 = vmatpush1.bf16.msra.mxu0 %v1203_v48 }
  0x86   : > { %691 = vmatprep.subr.bf16.mxu0 %v1208_v49 }
  0x87   : > { %850 = vmatpush1.bf16.msra.mxu1 %v1227_v28 }
  0x88   : > { %851 = vmatprep.subr.bf16.mxu1 %v1232_v29 }
  0x89   : > { %692 = vmatpush1.bf16.msra.mxu0 %v1206_v50 }
  0x8a   : > { %693 = vmatprep.subr.bf16.mxu0 %v1211_v51  ;;  %v1056_v51 = vld [vmem:[%s1620_s4 + $0x4] sm:$0x3] }
  0x8b   : > { %852 = vmatpush1.bf16.msra.mxu1 %v1230_v30  ;;  %v756_v53 = vrot.slane %v1056_v51, %v1553_v61 }
  0x8c   : > { %853 = vmatprep.subr.bf16.mxu1 %v1235_v31 }
  0x8d   : > { %694 = vmatpush1.bf16.msra.mxu0 %v1209_v52  ;;  %v752_v52 = vrot.slane %v1056_v51, %v1548_v59 }
  0x8f   : > { %854 = vmatpush1.bf16.msra.mxu1 %v1233_v32 }
 0x143   : > { %v418_v63 = vpop.f32.mrb[0].mxu0  ;;  %v539_v0 = vpop.f32.mrb[0].mxu1 }
 0x144   : > { %v540_v2 = vadd.f32 %v539_v0, %v418_v63  ;;  %v420_v3 = vpop.f32.mrb[1].mxu0  ;;  %v541_v4 = vpop.f32.mrb[1].mxu1 }
 0x145   : > { %v542_v5 = vadd.f32 %v541_v4, %v420_v3  ;;  %v422_v6 = vpop.f32.mrb[2].mxu0  ;;  %v543_v7 = vpop.f32.mrb[2].mxu1 }
 0x146   : > { %v558_v8 = vadd.f32 %v551_v62, %v540_v2  ;;  %v423_v9 = vpop.f32.mrb[3].mxu0  ;;  %v544_v10 = vpop.f32.mrb[3].mxu1 }
 0x147   : > { %v559_v11 = vadd.f32 %v555_v1, %v542_v5 }
 0x148   : > { %1236 = vtanh.f32 %v558_v8 }
 0x149   : > { %v561_v12 = vmul.f32 0.5, %v559_v11 }
 0x14b   : > { %1238 = vtanh.f32 %v561_v12 }
 0x152   : > { %v1237_v13 = vpop.eup %1236 }
 0x153   : > { %v565_v17 = vsub.f32 %v1237_v13, %v1542_v33 }
 0x155   : > { %v1239_v14 = vpop.eup %1238 }
 0x156   : > { %v563_v15 = vadd.f32 1.0, %v1239_v14 }
 0x158   : > { %v564_v16 = vmul.f32 0.5, %v563_v15 }
 0x15a   : > { %v566_v18 = vmul.f32 %v565_v17, %v564_v16 }
 0x15c   : > { %v567_v19 = vadd.f32 %v566_v18, %v1542_v33  ;;  %v1039_v33 = vld [vmem:[%s1620_s4 + $0x2] sm:$0x3] }
 0x15d   : > { %v592_v34 = vrot.slane %v1039_v33, %v1548_v59  ;;  %v596_v35 = vrot.slane %v1039_v33, %v1553_v61 }
 0x15e   : > { %v568_v20 = vpack.c.bf16 %v567_v19, %v567_v19 }
 0x160   : > { %712 = vmatmul.mubr.bf16.vlgmr.msra.gmra.mrb[4].mxu0 %v568_v20 }
 0x233   : > { %v713_v36 = vpop.f32.mrb[4].mxu0 }
 0x234   : > { %v714_v37 = vadd.f32 %v713_v36, %v592_v34  ;;  %v715_v38 = vpop.f32.mrb[5].mxu0 }
 0x235   : > { %v716_v39 = vadd.f32 %v715_v38, %v596_v35  ;;  %v717_v40 = vpop.f32.mrb[6].mxu0 }
 0x236   : > { %v718_v41 = vpop.f32.mrb[7].mxu0  ;;  %1240 = vtanh.f32 %v714_v37 }
 0x237   : > { %v721_v42 = vmul.f32 0.5, %v716_v39 }
 0x239   : > { %1242 = vtanh.f32 %v721_v42 }
 0x240   : > { %v1241_v43 = vpop.eup %1240 }
 0x241   : > { %v725_v47 = vsub.f32 %v1241_v43, %v567_v19 }
 0x243   : > { %v1243_v44 = vpop.eup %1242 }
 0x244   : > { %v723_v45 = vadd.f32 1.0, %v1243_v44 }
 0x246   : > { %v724_v46 = vmul.f32 0.5, %v723_v45 }
 0x248   : > { %v726_v48 = vmul.f32 %v725_v47, %v724_v46 }
 0x24a   : > { %v727_v49 = vadd.f32 %v726_v48, %v567_v19 }
 0x24c   : > { %v728_v50 = vpack.c.bf16 %v727_v49, %v727_v49 }
 0x24e   : > { %872 = vmatmul.mubr.bf16.vlgmr.msra.gmra.mrb[4].mxu1 %v728_v50 }
 0x321   : > { %v873_v54 = vpop.f32.mrb[4].mxu1 }
 0x322   : > { %v874_v55 = vadd.f32 %v873_v54, %v752_v52  ;;  %v875_v56 = vpop.f32.mrb[5].mxu1 }
 0x323   : > { %v876_v57 = vadd.f32 %v875_v56, %v756_v53  ;;  %v877_v58 = vpop.f32.mrb[6].mxu1 }
 0x324   : > { %v878_v60 = vpop.f32.mrb[7].mxu1  ;;  %1244 = vtanh.f32 %v874_v55 }
 0x325   : > { %v881_v62 = vmul.f32 0.5, %v876_v57 }
 0x327   : > { %1246 = vtanh.f32 %v881_v62 }
 0x32e   : > { %v1245_v63 = vpop.eup %1244 }
 0x32f   : > { %v885_v59 = vsub.f32 %v1245_v63, %v727_v49 }
 0x331   : > { %v1247_v0 = vpop.eup %1246 }
 0x332   : > { %v883_v1 = vadd.f32 1.0, %v1247_v0 }
 0x334   : > { %v884_v2 = vmul.f32 0.5, %v883_v1 }
 0x336   : > { %v886_v61 = vmul.f32 %v885_v59, %v884_v2 }
 0x338   : > { %v887_v3 = vadd.f32 %v886_v61, %v727_v49 }
 0x33a   : > { %888 = vst [vmem:[%s258_s8] sm:$0xff] %v887_v3 }
 0x33b   : > { %1317 = shalt.err (!%p1314_p11)
}
 0x33c   : > { %s1318_s15 = scalar_lea.hbm %s1574_s9, 128  ;;  %s1322_s7 = scalar_lea.hbm %s1621_s5, 256 }
 0x33d   : > { %p1319_p13 = scmp.ne.s32.totalorder %s1574_s9, %s1318_s15  ;;  %p1323_p6 = scmp.lt.u32.totalorder %s1574_s9, %s1621_s5 }
 0x33e   : > { %p1324_p9 = scmp.lt.u32.totalorder %s1322_s7, %s1318_s15  ;;  %p1326_p10 = scmp.lt.u32.totalorder %s1318_s15, %s1574_s9 }
 0x33f   : > { %p1320_p5 = pnand %p1319_p13, %p1634_p1 }
 0x340   : > { %p1325_p12 = por %p1324_p9, %p1323_p6 }
 0x341   : > { %p1321_p0 = pneg %p1320_p5 }
 0x342   : > { %p1327_p2 = por %p1326_p10, %p1325_p12 }
 0x344   : > { %p1328_p3 = pnand %p1327_p2, %p1321_p0 }
 0x346   : > { %1331 = shalt.err (!%p1328_p3)
}
 0x347   : > { %1085 = dma.vmem_to_hbm [thread:$0]  (%p1634_p1), %s1576_s10, 128, %s1574_s9, %s890_s11  }
 0x348 PF: > { %p1102_p4 = scmp.ge.s32.totalorder %s1374_s21, 2  ;;  %s915_s30 = sand.u32 1, %s1362_s18  }
 0x349   : > { %p1635_p7 = scmp.ne.s32.totalorder %s1626_s29, 0  ;;  %s916_s8 = scalar_lea.sflag [#allocation4], %s915_s30 }
 0x34b   : > { %p1095_p8 = pnand %p1102_p4, %p1635_p7 }
 0x34d   : > { %1357 = dma.done.wait (!%p1095_p8), %s916_s8, 128  }
 0x34e   : > { %1359 = vsyncadd (!%p1095_p8), %s916_s8, 4294967168  ;;  %p17_p11 = scmp.ge.s32.totalorder %s1437_s24, 4   ;;  %s1636_s18 = smov %s1366_s19 }
 0x34f   : > { %s1637_s19 = smov %s1370_s20  ;;  %s1638_s20 = smov %s1448_s27 }
 0x350   : > { %s1639_s21 = smov %s1437_s24  ;;  %19 = sbr.rel (!%p17_p11) target bundleno = 5 (0x5), region = 91 }
 0x357   :  { %921 = vsyncpa [#allocation3], 1 }
 0x358   :  { %923 = vsyncpa [#allocation3 + $0x1], 1 }
 0x359   :  { %924 = vsyncpa [#allocation6], 1 }
 0x35a   :  { %925 = vsyncpa [#allocation4], 1 }
 0x35b   :  { %927 = vsyncpa [#allocation4 + $0x1], 1 }

</bundles_post_ra>
